<compile_context>
chip_gen: v7x
topology: tpu7x:2x2x1
jax: 0.10.0
libtpu: 0.0.40
codegen_flags: <defaults>
</compile_context>

<pallas_src>
import functools
import math

import jax
import jax.numpy as jnp
from jax.experimental import pallas as pl
from jax.experimental.pallas import tpu as pltpu

HIDDEN = 32
NUM_HEADS = 4
HEAD_DIM = HIDDEN // NUM_HEADS
SEQ = 8
BATCH = 2
EPS = 1e-5  # ScaleNorm eps


def _sublayer1_kernel(x_ref, w_qkv_ref, pool_ref, expand_ref, o_ref, *,
                      batch, seq, heads, head_dim):
    # x_ref: (B*L, D) VMEM; w_qkv_ref: (D, 3D) fused (g and 1/sqrt(dk) folded in);
    # pool_ref: (D, H) one-hot head-pooling matrix; expand_ref: (H, D) = pool^T.
    D = heads * head_dim
    x = x_ref[...].astype(jnp.float32)                       # (B*L, D)

    # --- ScaleNorm (prenorm); learnable gain g is folded into w_qkv on host ---
    nrm = jnp.sqrt(jnp.sum(x * x, axis=-1, keepdims=True))
    xn = x / jnp.maximum(nrm, EPS)

    # --- fused QKV projection: single MXU push (B*L, D) x (D, 3D) ---
    qkv = jnp.dot(xn, w_qkv_ref[...], preferred_element_type=jnp.float32)
    q = qkv[:, 0:D].reshape(batch, seq, D)                   # (B, L, D), lanes=[h,d]
    k = qkv[:, D:2 * D].reshape(batch, seq, D)
    v = qkv[:, 2 * D:3 * D].reshape(batch, seq, D)

    # --- attention with NO per-head slices / transposes / tiny matmuls ---
    # prod[b,i,j,c] = q[b,i,c] * k[b,j,c]
    prod = q[:, :, None, :] * k[:, None, :, :]               # (B, Li, Lj, D)
    rows = batch * seq * seq                                 # 128 -> full sublane use

    # per-head score pooling: s[b,i,j,h] = sum_{c in head h} prod[b,i,j,c]
    # (query already carries 1/sqrt(dk) via the folded weight)
    s = jnp.dot(prod.reshape(rows, D), pool_ref[...],
                preferred_element_type=jnp.float32)          # (B*Li*Lj, H)
    s = s.reshape(batch, seq, seq, heads)                    # (B, Li, Lj, H)

    # softmax over the key axis (axis=2, sublane reduce)
    s = s - jnp.max(s, axis=2, keepdims=True)
    p = jnp.exp(s)
    # approx EUP reciprocal (~1e-3 rel err): fine for this eval-mode forward.
    p = p * pl.reciprocal(jnp.sum(p, axis=2, keepdims=True), approx=True)

    # head-expand: p_full[b,i,j,c] = p[b,i,j, c // head_dim]
    p_full = jnp.dot(p.reshape(rows, heads), expand_ref[...],
                     preferred_element_type=jnp.float32)     # (B*Li*Lj, D)
    p_full = p_full.reshape(batch, seq, seq, D)

    # o[b,i,c] = sum_j p_full[b,i,j,c] * v[b,j,c]
    attn = jnp.sum(p_full * v[:, None, :, :], axis=2)        # (B, Li, D)
    attn = attn.reshape(batch * seq, D)

    # --- prenorm residual, single full-width store ---
    # TODO(synk): attention_mask / nystrom / conv branches not implemented
    # (forward defaults give attention_mask=None, nystrom=False, kernel_size=None).
    o_ref[...] = (attn + x).astype(o_ref.dtype)


def init_sublayer1_params(wq_t, wk_t, wv_t, g):
    """One-time (model init) parameter fusion — NOT done per forward call.

    Folds the ScaleNorm gain g into all three projections and 1/sqrt(dk) into
    the query projection, and builds the head pool/expand matrices.
    """
    inv_sqrt_dk = 1.0 / math.sqrt(HEAD_DIM)
    gg = g.reshape(())
    w_qkv = jnp.concatenate(
        [wq_t * (gg * inv_sqrt_dk), wk_t * gg, wv_t * gg], axis=1)   # (D, 3D)
    c = jnp.arange(HIDDEN, dtype=jnp.int32)[:, None]                 # (D, 1)
    h = jnp.arange(NUM_HEADS, dtype=jnp.int32)[None, :]              # (1, H)
    pool = (c // HEAD_DIM == h).astype(jnp.float32)                  # (D, H)
    expand = jnp.asarray(pool.T)                                     # (H, D)
    return w_qkv, pool, expand


def sublayer1(x, w_qkv, pool, expand):
    B, L, D = x.shape
    assert D == NUM_HEADS * HEAD_DIM
    x2 = x.reshape(B * L, D)

    kernel = functools.partial(
        _sublayer1_kernel, batch=B, seq=L, heads=NUM_HEADS, head_dim=HEAD_DIM)

    # Gridless: total footprint (~30 KiB) fits VMEM on v5e/v6e/v7x with huge
    # margin, so no grid / pipelining is used (per review).
    out2 = pl.pallas_call(
        kernel,
        out_shape=jax.ShapeDtypeStruct((B * L, D), x.dtype),
        in_specs=[
            pl.BlockSpec(memory_space=pltpu.MemorySpace.VMEM),   # x (flattened)
            pl.BlockSpec(memory_space=pltpu.MemorySpace.VMEM),   # fused QKV weight
            pl.BlockSpec(memory_space=pltpu.MemorySpace.VMEM),   # head-pool matrix
            pl.BlockSpec(memory_space=pltpu.MemorySpace.VMEM),   # head-expand matrix
        ],
        out_specs=pl.BlockSpec(memory_space=pltpu.MemorySpace.VMEM),
    )(x2, w_qkv, pool, expand)
    return out2.reshape(B, L, D)


def sublayer1_reference(x, wq_t, wk_t, wv_t, g):
    """Pure-JAX reference of the same forward pass (unfused params)."""
    B, L, D = x.shape
    nrm = jnp.sqrt(jnp.sum(x * x, axis=-1, keepdims=True))
    xn = x * (g[0] / jnp.maximum(nrm, EPS))
    q = xn @ wq_t
    k = xn @ wk_t
    v = xn @ wv_t

    def split(t):
        return t.reshape(B, L, NUM_HEADS, HEAD_DIM).transpose(0, 2, 1, 3)

    qh, kh, vh = split(q), split(k), split(v)
    s = jnp.einsum("bhld,bhmd->bhlm", qh, kh) / math.sqrt(HEAD_DIM)
    p = jax.nn.softmax(s, axis=-1)
    out = jnp.einsum("bhlm,bhmd->bhld", p, vh)
    out = out.transpose(0, 2, 1, 3).reshape(B, L, D)
    return out + x


if __name__ == "__main__":
    key = jax.random.PRNGKey(0)
    kx, kq, kk, kv = jax.random.split(key, 4)

    x = jax.random.normal(kx, (BATCH, SEQ, HIDDEN), dtype=jnp.float32)
    # PyTorch nn.Linear weights are (out, in); we generate them and pass W.T.
    wq = jax.random.normal(kq, (HIDDEN, HIDDEN), dtype=jnp.float32) * 0.05
    wk = jax.random.normal(kk, (HIDDEN, HIDDEN), dtype=jnp.float32) * 0.05
    wv = jax.random.normal(kv, (HIDDEN, HIDDEN), dtype=jnp.float32) * 0.05
    g = jnp.array([math.sqrt(HIDDEN)], dtype=jnp.float32)  # ScaleNorm init sqrt(d)

    wq_t, wk_t, wv_t = wq.T, wk.T, wv.T

    # One-time parameter fusion (model init).
    w_qkv, pool, expand = init_sublayer1_params(wq_t, wk_t, wv_t, g)
    w_qkv, pool, expand = map(jax.block_until_ready, (w_qkv, pool, expand))

    out = sublayer1(x, w_qkv, pool, expand)
    jax.block_until_ready(out)

    ref = sublayer1_reference(x, wq_t, wk_t, wv_t, g)
    assert out.shape == (BATCH, SEQ, HIDDEN)
    # tolerance accommodates the approx (EUP) softmax reciprocal (~1e-3 rel)
    assert jnp.allclose(out, ref, atol=2e-3, rtol=2e-3), "mismatch vs reference"

    print("KERNEL_OK")
</pallas_src>

<mosaic_0001>
module attributes {stable_mosaic.version = 11 : i64} {
  func.func @_sublayer1_kernel(%arg0: memref<16x32xf32, #tpu.memory_space<vmem>>, %arg1: memref<32x96xf32, #tpu.memory_space<vmem>>, %arg2: memref<32x4xf32, #tpu.memory_space<vmem>>, %arg3: memref<4x32xf32, #tpu.memory_space<vmem>>, %arg4: memref<16x32xf32, #tpu.memory_space<vmem>>) attributes {dimension_semantics = [], scalar_prefetch = 0 : i64, scratch_operands = 0 : i64, tpu.core_type = #tpu.core_type<tc>} {
    %c0 = arith.constant 0 : index
    %c0_0 = arith.constant 0 : index
    %0 = vector.load %arg0[%c0, %c0_0] : memref<16x32xf32, #tpu.memory_space<vmem>>, vector<16x32xf32>
    %1 = arith.mulf %0, %0 : vector<16x32xf32>
    %cst = arith.constant dense<0.000000e+00> : vector<16xf32>
    %2 = vector.multi_reduction <add>, %1, %cst [1] : vector<16x32xf32> to vector<16xf32>
    %3 = vector.shape_cast %2 : vector<16xf32> to vector<16x1xf32>
    %4 = math.sqrt %3 : vector<16x1xf32>
    %cst_1 = arith.constant 9.99999974E-6 : f32
    %5 = vector.broadcast %cst_1 : f32 to vector<16x1xf32>
    %6 = arith.maximumf %4, %5 : vector<16x1xf32>
    %7 = vector.broadcast %6 : vector<16x1xf32> to vector<16x32xf32>
    %8 = arith.divf %0, %7 : vector<16x32xf32>
    %c0_2 = arith.constant 0 : index
    %c0_3 = arith.constant 0 : index
    %9 = vector.load %arg1[%c0_2, %c0_3] : memref<32x96xf32, #tpu.memory_space<vmem>>, vector<32x96xf32>
    %cst_4 = arith.constant dense<0.000000e+00> : vector<16x96xf32>
    %10 = tpu.matmul %8, %9, %cst_4 {dimension_numbers = #tpu.dot_dimension_numbers<[1], [0], [0], [1], [0, 0, 1, 1], [], []>} : vector<16x32xf32>, vector<32x96xf32>, vector<16x96xf32> -> vector<16x96xf32>
    %11 = vector.extract_strided_slice %10 {offsets = [0, 0], sizes = [16, 32], strides = [1, 1]} : vector<16x96xf32> to vector<16x32xf32>
    %12 = vector.shape_cast %11 : vector<16x32xf32> to vector<2x8x32xf32>
    %13 = vector.extract_strided_slice %10 {offsets = [0, 32], sizes = [16, 32], strides = [1, 1]} : vector<16x96xf32> to vector<16x32xf32>
    %14 = vector.shape_cast %13 : vector<16x32xf32> to vector<2x8x32xf32>
    %15 = vector.extract_strided_slice %10 {offsets = [0, 64], sizes = [16, 32], strides = [1, 1]} : vector<16x96xf32> to vector<16x32xf32>
    %16 = vector.shape_cast %15 : vector<16x32xf32> to vector<2x8x32xf32>
    %17 = vector.shape_cast %12 : vector<2x8x32xf32> to vector<2x8x1x32xf32>
    %18 = vector.shape_cast %14 : vector<2x8x32xf32> to vector<2x1x8x32xf32>
    %19 = vector.broadcast %17 : vector<2x8x1x32xf32> to vector<2x8x8x32xf32>
    %20 = vector.broadcast %18 : vector<2x1x8x32xf32> to vector<2x8x8x32xf32>
    %21 = arith.mulf %19, %20 : vector<2x8x8x32xf32>
    %22 = vector.shape_cast %21 : vector<2x8x8x32xf32> to vector<128x32xf32>
    %c0_5 = arith.constant 0 : index
    %c0_6 = arith.constant 0 : index
    %23 = vector.load %arg2[%c0_5, %c0_6] : memref<32x4xf32, #tpu.memory_space<vmem>>, vector<32x4xf32>
    %cst_7 = arith.constant dense<0.000000e+00> : vector<128x4xf32>
    %24 = tpu.matmul %22, %23, %cst_7 {dimension_numbers = #tpu.dot_dimension_numbers<[1], [0], [0], [1], [0, 0, 1, 1], [], []>} : vector<128x32xf32>, vector<32x4xf32>, vector<128x4xf32> -> vector<128x4xf32>
    %25 = vector.shape_cast %24 : vector<128x4xf32> to vector<2x8x8x4xf32>
    %cst_8 = arith.constant dense<0xFF800000> : vector<2x8x4xf32>
    %26 = vector.multi_reduction <maximumf>, %25, %cst_8 [2] : vector<2x8x8x4xf32> to vector<2x8x4xf32>
    %27 = vector.shape_cast %26 : vector<2x8x4xf32> to vector<2x8x1x4xf32>
    %28 = vector.broadcast %27 : vector<2x8x1x4xf32> to vector<2x8x8x4xf32>
    %29 = arith.subf %25, %28 : vector<2x8x8x4xf32>
    %30 = math.exp %29 : vector<2x8x8x4xf32>
    %cst_9 = arith.constant dense<0.000000e+00> : vector<2x8x4xf32>
    %31 = vector.multi_reduction <add>, %30, %cst_9 [2] : vector<2x8x8x4xf32> to vector<2x8x4xf32>
    %32 = vector.shape_cast %31 : vector<2x8x4xf32> to vector<2x8x1x4xf32>
    %33 = tpu.reciprocal %32 {approx = true} : vector<2x8x1x4xf32> -> vector<2x8x1x4xf32>
    %34 = vector.broadcast %33 : vector<2x8x1x4xf32> to vector<2x8x8x4xf32>
    %35 = arith.mulf %30, %34 : vector<2x8x8x4xf32>
    %36 = vector.shape_cast %35 : vector<2x8x8x4xf32> to vector<128x4xf32>
    %c0_10 = arith.constant 0 : index
    %c0_11 = arith.constant 0 : index
    %37 = vector.load %arg3[%c0_10, %c0_11] : memref<4x32xf32, #tpu.memory_space<vmem>>, vector<4x32xf32>
    %cst_12 = arith.constant dense<0.000000e+00> : vector<128x32xf32>
    %38 = tpu.matmul %36, %37, %cst_12 {dimension_numbers = #tpu.dot_dimension_numbers<[1], [0], [0], [1], [0, 0, 1, 1], [], []>} : vector<128x4xf32>, vector<4x32xf32>, vector<128x32xf32> -> vector<128x32xf32>
    %39 = vector.shape_cast %38 : vector<128x32xf32> to vector<2x8x8x32xf32>
    %40 = vector.shape_cast %16 : vector<2x8x32xf32> to vector<2x1x8x32xf32>
    %41 = vector.broadcast %40 : vector<2x1x8x32xf32> to vector<2x8x8x32xf32>
    %42 = arith.mulf %39, %41 : vector<2x8x8x32xf32>
    %cst_13 = arith.constant dense<0.000000e+00> : vector<2x8x32xf32>
    %43 = vector.multi_reduction <add>, %42, %cst_13 [2] : vector<2x8x8x32xf32> to vector<2x8x32xf32>
    %44 = vector.shape_cast %43 : vector<2x8x32xf32> to vector<16x32xf32>
    %45 = arith.addf %44, %0 : vector<16x32xf32>
    %c0_14 = arith.constant 0 : index
    %c0_15 = arith.constant 0 : index
    %46 = vector.load %arg4[%c0_14, %c0_15] : memref<16x32xf32, #tpu.memory_space<vmem>>, vector<16x32xf32>
    tpu.vector_store %arg4[%c0_14, %c0_15], %45 {strides = array<i32>} : memref<16x32xf32, #tpu.memory_space<vmem>>, vector<16x32xf32>,
    return
  }
}

</mosaic_0001>

<bundles_post_ra>
// kernel: tpu_custom_call.1
= control target key start
LH: loop header
LB: loop body
LE: loop exit
PB: predicated region body
PF: predicated region fallthrough
CT: control target
= control target key end

     0   :  { %9 = vsyncpa [#allocation3], 0  ;;  %s1949_s0 = inlined_call_operand.hbm [shape: f32[16,32], index: 0, kind: input, shape index: {}]   ;;  %s1950_s1 = inlined_call_operand.vmem [shape: f32[32,96], index: 1, kind: input, shape index: {}]   ;;  %s1951_s2 = inlined_call_operand.vmem [shape: f32[32,4], index: 2, kind: input, shape index: {}]   ;;  %s1952_s3 = inlined_call_operand.vmem [shape: f32[4,32], index: 3, kind: input, shape index: {}]   ;;  %s1953_s4 = inlined_call_operand.hbm [shape: f32[16,32], index: 4, kind: output, shape index: {}]  }
   0x1   :  { %10 = vsyncpa [#allocation4], 0  ;;  %s1596_s15 = smov [#allocation2]   ;;  %s1548_s19 = scalar_lea.hbm %s1949_s0, 256 }
   0x2   :  { %s16_s16 = sshll.u32 %s1596_s15, 4  ;;  %p1549_p0 = scmp.ne.s32.totalorder %s1949_s0, %s1548_s19  ;;  %s17_s16 = int_to_ptr.vmem [resolvable:$true] %s16_s16 }
   0x3   :  { %p1552_p1 = scmp.lt.u32.totalorder %s1548_s19, %s1949_s0 }
   0x5   :  { %p1554_p2 = pnand %p1552_p1, %p1549_p0 }
   0x7   :  { %1557 = shalt.err (!%p1554_p2)
}
   0x8   :  { %s1558_s24 = scalar_lea.vmem %s17_s16, 256  ;;  %p1563_p4 = scmp.lt.s32.totalorder %s17_s16, %s17_s16 }
   0x9   :  { %p1559_p3 = scmp.ne.s32.totalorder %s17_s16, %s1558_s24  ;;  %p1564_p5 = scmp.lt.s32.totalorder %s1558_s24, %s1558_s24 }
   0xb   :  { %p1565_p6 = por %p1564_p5, %p1563_p4 }
   0xd   :  { %p1566_p7 = pnand %p1565_p6, %p1559_p3 }
   0xf   :  { %1569 = shalt.err (!%p1566_p7)
}
  0x10   :  { %s1597_s25 = smov 128   ;;  %s1598_s26 = smov 8  }
  0x11   :  { %22 = dma.hbm_to_vmem [thread:$0]  %s1949_s0, 256, %s17_s16, [#allocation3], %s1597_s25, %s1597_s25, %s1598_s26  }
  0x12   :  { %1592 = dma.done.wait [#allocation3], 256  }
  0x13   :  { %1593 = vsyncadd [#allocation3], 4294967040  ;;  %v32_v0 = vld [vmem:[#allocation2] sm:$0xff]  ;;  %vm36_vm0 = vcmask 261120   ;;  %v33_v1 = vld [vmem:[#allocation2 + $0x8] sm:$0xff]  ;;  %s1599_s17 = smov 64   ;;  %v154_v40 = vlaneseq }
  0x14   :  { %v34_v2 = vmul.f32 %v32_v0, %v32_v0  ;;  %v35_v3 = vmul.f32 %v33_v1, %v33_v1  ;;  %v63_v6 = vld [vmem:[%s1950_s1] sm:$0xff]  ;;  %v64_v7 = vld [vmem:[%s1950_s1 + $0x8] sm:$0xff]  ;;  %v65_v8 = vld [vmem:[%s1950_s1 + $0x10] sm:$0xff]  ;;  %s1600_s18 = smov 96   ;;  %v1601_v38 = vmov 1966171168  }
  0x15   :  { %v1451_v9 = vpack.c.bf16 %v64_v7, %v63_v6  ;;  %v66_v10 = vld [vmem:[%s1950_s1 + $0x18] sm:$0xff]  ;;  %v350_v30 = vld [vmem:[%s1951_s2] sm:$0xff]  ;;  %v351_v31 = vld [vmem:[%s1951_s2 + $0x8] sm:$0xff]  ;;  %v152_v39 = vunpack.c.l.s4 %v1601_v38  ;;  %v155_v42 = vshrl.u32 %v154_v40, 7  ;;  %vm901_vm5 = vcmask 1043456  }
  0x16   :  { %v37_v4 = vsel %vm36_vm0, %v34_v2, 0.0  ;;  %v40_v5 = vsel %vm36_vm0, %v35_v3, 0.0  ;;  %v1455_v11 = vpack.c.bf16 %v66_v10, %v65_v8  ;;  %v352_v32 = vld [vmem:[%s1951_s2 + $0x10] sm:$0xff]  ;;  %v1459_v33 = vpack.c.bf16 %v351_v31, %v350_v30  ;;  %v353_v34 = vld [vmem:[%s1951_s2 + $0x18] sm:$0xff] }
  0x17   :  { %38 = vadd.xlane.f32.xlu0 %v37_v4  ;;  %1452 = vmatprep.subr.bf16.mxu0 %v1451_v9  ;;  %v1463_v35 = vpack.c.bf16 %v353_v34, %v352_v32  ;;  %v153_v41 = vunpack.c.0.s8 %v152_v39  ;;  %v1671_v48 = vsub.s32 0, %v155_v42  ;;  %vm547_vm6 = vcmask 31744  }
  0x18   :  { %1454 = vmatpush3.bf16.msra.mxu0 %v1451_v9  ;;  %1460 = vmatprep.subr.bf16.mxu1 %v1459_v33  ;;  %vm1249_vm7 = vcmask 1041409   ;;  %vm1252_vm8 = vcmask 1042434   ;;  %vm1255_vm9 = vcmask 1043459   ;;  %vm1258_vm10 = vcmask 1044484  }
  0x19   :  { %1456 = vmatprep.subr.bf16.mxu0 %v1455_v11  ;;  %1462 = vmatpush3.bf16.msra.mxu1 %v1459_v33  ;;  %v156_v43 = vsub.s32 %v153_v41, %v155_v42  ;;  %v852_v41 = vld [vmem:[%s1952_s3] sm:$0xf]  ;;  %vm1261_vm11 = vcmask 1045509   ;;  %vm1264_vm12 = vcmask 1046534   ;;  %vm1267_vm13 = vcmask 1047559   ;;  %s1602_s3 = smov [#allocation5]  }
  0x1a   :  { %1464 = vmatprep.subr.bf16.mxu1 %v1463_v35  ;;  %s1292_s20 = sshll.u32 %s1602_s3, 4  ;;  %s1293_s20 = int_to_ptr.vmem [resolvable:$true] %s1292_s20 }
  0x1b   :  { %41 = vadd.xlane.f32.xlu0 %v40_v5  ;;  %s1570_s21 = scalar_lea.vmem %s1293_s20, 256  ;;  %p1575_p9 = scmp.lt.s32.totalorder %s1293_s20, %s1293_s20 }
  0x1c   :  { %1458 = vmatpush3.bf16.msra.mxu0 %v1455_v11  ;;  %p1571_p8 = scmp.ne.s32.totalorder %s1293_s20, %s1570_s21  ;;  %p1576_p10 = scmp.lt.s32.totalorder %s1570_s21, %s1570_s21 }
  0x1d   :  { %1466 = vmatpush3.bf16.msra.mxu1 %v1463_v35  ;;  %1425 = vmatprep.subr.msk.mxu0 %vm901_vm5, %v852_v41 }
  0x1e   :  { %p1577_p11 = por %p1576_p10, %p1575_p9 }
  0x20   :  { %p1578_p12 = pnand %p1577_p11, %p1571_p8 }
  0xa4   :  { %v39_v12 = vpop.xlane.xlu0 %38 }
  0xa5   :  { %1474 = vrsqrt.f32 %v39_v12  ;;  %vm45_vm1 = vcmp.eq.f32.partialorder %v39_v12, inf  ;;  %v48_v16 = vand.u32 2147483648, %v39_v12  ;;  %vm47_vm2 = vcmp.eq.f32.partialorder %v39_v12, 0.0 }
  0xa8   :  { %v42_v13 = vpop.xlane.xlu0 %41 }
  0xa9   :  { %1476 = vrsqrt.f32 %v42_v13  ;;  %vm52_vm3 = vcmp.eq.f32.partialorder %v42_v13, inf  ;;  %v55_v22 = vand.u32 2147483648, %v42_v13  ;;  %vm54_vm4 = vcmp.eq.f32.partialorder %v42_v13, 0.0 }
  0xaf   :  { %v1475_v14 = vpop.eup %1474 }
  0xb0   :  { %v44_v15 = vmul.f32 %v1475_v14, %v39_v12 }
  0xb2   :  { %v46_v17 = vsel %vm45_vm1, %v39_v12, %v44_v15 }
  0xb3   :  { %v1477_v18 = vpop.eup %1476  ;;  %v49_v19 = vsel %vm47_vm2, %v48_v16, %v46_v17 }
  0xb4   :  { %v51_v20 = vmul.f32 %v1477_v18, %v42_v13  ;;  %v57_v21 = vmax.f32 %v49_v19, 1e-05 }
  0xb6   :  { %v53_v23 = vsel %vm52_vm3, %v42_v13, %v51_v20  ;;  %1478 = vrcp.f32 %v57_v21 }
  0xb7   :  { %v56_v24 = vsel %vm54_vm4, %v55_v22, %v53_v23 }
  0xb8   :  { %v58_v25 = vmax.f32 %v56_v24, 1e-05 }
  0xba   :  { %1480 = vrcp.f32 %v58_v25 }
  0xc0   :  { %v1479_v26 = vpop.eup %1478 }
  0xc1   :  { %v60_v27 = vmul.f32 %v1479_v26, %v32_v0 }
  0xc3   :  { %1390 = vmatprep.mubr.msk.f32.mxu0 %vm36_vm0, %v60_v27 }
  0xc4   :  { %v1481_v28 = vpop.eup %1480 }
  0xc5   :  { %v62_v29 = vmul.f32 %v1481_v28, %v33_v1 }
  0xc7   :  { %1391 = vmatmul.mubr.msk.f32.vlgmr.msra.gmra.mrb[0].mxu0 %vm36_vm0, %v62_v29 }
  0xc8   :  { %1426 = vmatpush3.msk.msra.mxu0 %vm901_vm5, %v852_v41 }
 0x19a   :  { %v1392_v36 = vpop.f32.mrb[0].mxu0 }
 0x19b   :  { %v139_v37 = vpop.f32.mrb[1].mxu0  ;;  %v206_v62 = vrot.slane %v1392_v36, %v156_v43  ;;  %v199_v5 = vcombine.high %v1392_v36, %v1392_v36 }
 0x19c   :  { %1050 = vrot.lane.b32.xlu0 %v139_v37, %s1599_s17  ;;  %328 = vrot.lane.b32.xlu1 %v139_v37, %s1600_s18  ;;  %v157_v44 = vrot.slane %v139_v37, %v156_v43  ;;  %v150_v46 = vcombine.high %v139_v37, %v139_v37 }
 0x19d   :  { %v214_v6 = vcombine.high %v206_v62, %v206_v62  ;;  %v222_v9 = vrot.slane %v206_v62, %v156_v43  ;;  %v213_v13 = vrot.slane %v199_v5, %v156_v43 }
 0x19e   :  { %v165_v45 = vcombine.high %v157_v44, %v157_v44  ;;  %v173_v47 = vrot.slane %v157_v44, %v156_v43  ;;  %v164_v50 = vrot.slane %v150_v46, %v156_v43 }
 0x19f   :  { %v236_v14 = vrot.slane %v214_v6, %v156_v43  ;;  %v244_v17 = vcombine.high %v222_v9, %v222_v9  ;;  %v283_v18 = vrot.slane %v222_v9, %v1671_v48  ;;  %v215_v21 = vcombine.high %v213_v13, %v213_v13 }
 0x1a0   :  { %330 = vrot.lane.b32.xlu1 %v1392_v36, %s1600_s18  ;;  %v187_v49 = vrot.slane %v165_v45, %v156_v43  ;;  %v195_v51 = vcombine.high %v173_v47, %v173_v47  ;;  %v251_v52 = vrot.slane %v173_v47, %v1671_v48  ;;  %v166_v54 = vcombine.high %v164_v50, %v164_v50 }
 0x1a1   :  { %v180_v57 = vrot.slane %v164_v50, %v156_v43  ;;  %v287_v22 = vrot.slane %v236_v14, %v1671_v48  ;;  %v246_v23 = vcombine.high %v236_v14, %v236_v14  ;;  %v229_v24 = vrot.slane %v213_v13, %v156_v43 }
 0x1a2   :  { %v255_v53 = vrot.slane %v187_v49, %v1671_v48  ;;  %v197_v56 = vcombine.high %v187_v49, %v187_v49  ;;  %v259_v60 = vrot.slane %v195_v51, %v1671_v48  ;;  %v194_v0 = vrot.slane %v166_v54, %v156_v43 }
 0x1a3   :  { %v267_v1 = vrot.slane %v180_v57, %v1671_v48  ;;  %v196_v2 = vcombine.high %v180_v57, %v180_v57  ;;  %v291_v25 = vrot.slane %v244_v17, %v1671_v48  ;;  %v295_v28 = vrot.slane %v246_v23, %v1671_v48 }
 0x1a4   :  { %1052 = vrot.lane.b32.xlu1 %v1392_v36, %s1599_s17  ;;  %v263_v63 = vrot.slane %v197_v56, %v1671_v48  ;;  %v271_v7 = vrot.slane %v194_v0, %v1671_v48  ;;  %v198_v8 = vcombine.high %v194_v0, %v194_v0  ;;  %v243_v29 = vrot.slane %v215_v21, %v156_v43 }
 0x1a5   :  { %v275_v10 = vrot.slane %v196_v2, %v1671_v48  ;;  %v299_v30 = vrot.slane %v229_v24, %v1671_v48  ;;  %v245_v31 = vcombine.high %v229_v24, %v229_v24 }
 0x1a6   :  { %v279_v16 = vrot.slane %v198_v8, %v1671_v48  ;;  %v303_v34 = vrot.slane %v243_v29, %v1671_v48  ;;  %v247_v35 = vcombine.high %v243_v29, %v243_v29 }
 0x1a7   :  { %v307_v36 = vrot.slane %v245_v31, %v1671_v48 }
 0x1a8   :  { %v311_v39 = vrot.slane %v247_v35, %v1671_v48 }
 0x20e   :  { %v329_v55 = vpop.permute.xlu1 %328 }
 0x20f   :  { %v334_v58 = vmul.f32 %v329_v55, %v251_v52  ;;  %v335_v59 = vmul.f32 %v329_v55, %v255_v53  ;;  %v336_v61 = vmul.f32 %v329_v55, %v259_v60  ;;  %v337_v3 = vmul.f32 %v329_v55, %v263_v63 }
 0x210   :  { %v338_v4 = vmul.f32 %v329_v55, %v267_v1  ;;  %v339_v11 = vmul.f32 %v329_v55, %v271_v7  ;;  %v340_v12 = vmul.f32 %v329_v55, %v275_v10  ;;  %v341_v19 = vmul.f32 %v329_v55, %v279_v16 }
 0x211   :  { %1401 = vmatprep.mubr.msk.f32.mxu1 %vm36_vm0, %v334_v58 }
 0x212   :  { %1402 = vmatmul.mubr.msk.f32.vlgmr.msra.gmra.mrb[0].mxu1 %vm36_vm0, %v335_v59  ;;  %v331_v15 = vpop.permute.xlu1 %330 }
 0x213   :  { %1404 = vmatprep.mubr.msk.f32.mxu1 %vm36_vm0, %v336_v61  ;;  %v342_v20 = vmul.f32 %v331_v15, %v283_v18  ;;  %v343_v26 = vmul.f32 %v331_v15, %v287_v22  ;;  %v344_v27 = vmul.f32 %v331_v15, %v291_v25  ;;  %v345_v32 = vmul.f32 %v331_v15, %v295_v28 }
 0x214   :  { %v346_v33 = vmul.f32 %v331_v15, %v299_v30  ;;  %v347_v37 = vmul.f32 %v331_v15, %v303_v34  ;;  %v348_v38 = vmul.f32 %v331_v15, %v307_v36  ;;  %v349_v40 = vmul.f32 %v331_v15, %v311_v39 }
 0x216   :  { %1405 = vmatmul.mubr.msk.f32.gmra.mrb[2].mxu1 %vm36_vm0, %v337_v3 }
 0x217   :  { %1407 = vmatprep.mubr.msk.f32.mxu1 %vm36_vm0, %v338_v4 }
 0x21a   :  { %1408 = vmatmul.mubr.msk.f32.gmra.mrb[4].mxu1 %vm36_vm0, %v339_v11 }
 0x21b   :  { %1410 = vmatprep.mubr.msk.f32.mxu1 %vm36_vm0, %v340_v12 }
 0x21e   :  { %1411 = vmatmul.mubr.msk.f32.gmra.mrb[6].mxu1 %vm36_vm0, %v341_v19 }
 0x21f   :  { %1413 = vmatprep.mubr.msk.f32.mxu1 %vm36_vm0, %v342_v20 }
 0x222   :  { %1414 = vmatmul.mubr.msk.f32.gmra.mrb[8].mxu1 %vm36_vm0, %v343_v26 }
 0x223   :  { %1416 = vmatprep.mubr.msk.f32.mxu1 %vm36_vm0, %v344_v27 }
 0x226   :  { %1417 = vmatmul.mubr.msk.f32.gmra.mrb[10].mxu1 %vm36_vm0, %v345_v32 }
 0x227   :  { %1419 = vmatprep.mubr.msk.f32.mxu1 %vm36_vm0, %v346_v33 }
 0x22a   :  { %1420 = vmatmul.mubr.msk.f32.gmra.mrb[12].mxu1 %vm36_vm0, %v347_v37 }
 0x22b   :  { %1422 = vmatprep.mubr.msk.f32.mxu1 %vm36_vm0, %v348_v38 }
 0x22e   :  { %1423 = vmatmul.mubr.msk.f32.gmra.mrb[14].mxu1 %vm36_vm0, %v349_v40 }
 0x2e5   :  { %v1403_v42 = vpop.f32.mrb[0].mxu1 }
 0x2e6   :  { %v555_v43 = vsel %vm547_vm6, %v1403_v42, -inf  ;;  %v468_v44 = vpop.f32.mrb[1].mxu1 }
 0x2e7   :  { %v556_v45 = vrot.slane %v555_v43, 4  ;;  %v548_v46 = vsel %vm547_vm6, %v468_v44, -inf }
 0x2e8   :  { %v549_v47 = vrot.slane %v548_v46, 4 }
 0x2e9   :  { %v557_v48 = vmax.f32 %v555_v43, %v556_v45  ;;  %v1406_v49 = vpop.f32.mrb[2].mxu1 }
 0x2ea   :  { %v550_v50 = vmax.f32 %v548_v46, %v549_v47  ;;  %v569_v51 = vsel %vm547_vm6, %v1406_v49, -inf  ;;  %v478_v52 = vpop.f32.mrb[3].mxu1 }
 0x2eb   :  { %v558_v53 = vrot.slane %v557_v48, 2  ;;  %v570_v54 = vrot.slane %v569_v51, 4  ;;  %v562_v55 = vsel %vm547_vm6, %v478_v52, -inf }
 0x2ec   :  { %v551_v56 = vrot.slane %v550_v50, 2  ;;  %v563_v57 = vrot.slane %v562_v55, 4 }
 0x2ed   :  { %v559_v58 = vmax.f32 %v557_v48, %v558_v53  ;;  %v571_v59 = vmax.f32 %v569_v51, %v570_v54  ;;  %v1712_v60 = vpop.f32.mrb[4].mxu1 }
 0x2ee   :  { %v552_v61 = vmax.f32 %v550_v50, %v551_v56  ;;  %v564_v62 = vmax.f32 %v562_v55, %v563_v57  ;;  %v583_v63 = vsel %vm547_vm6, %v1712_v60, -inf  ;;  %v1716_v0 = vpop.f32.mrb[5].mxu1 }
 0x2ef   :  { %v560_v1 = vrot.slane %v559_v58, 1  ;;  %v572_v2 = vrot.slane %v571_v59, 2  ;;  %v584_v3 = vrot.slane %v583_v63, 4  ;;  %v576_v4 = vsel %vm547_vm6, %v1716_v0, -inf }
 0x2f0   :  { %v553_v5 = vrot.slane %v552_v61, 1  ;;  %v565_v6 = vrot.slane %v564_v62, 2  ;;  %v577_v7 = vrot.slane %v576_v4, 4 }
 0x2f1   :  { %v561_v8 = vmax.f32 %v559_v58, %v560_v1  ;;  %v573_v9 = vmax.f32 %v571_v59, %v572_v2  ;;  %v585_v10 = vmax.f32 %v583_v63, %v584_v3  ;;  %v1720_v11 = vpop.f32.mrb[6].mxu1 }
 0x2f2   :  { %v554_v12 = vmax.f32 %v552_v61, %v553_v5  ;;  %v566_v13 = vmax.f32 %v564_v62, %v565_v6  ;;  %v578_v14 = vmax.f32 %v576_v4, %v577_v7  ;;  %v597_v15 = vsel %vm547_vm6, %v1720_v11, -inf  ;;  %v1724_v16 = vpop.f32.mrb[7].mxu1 }
 0x2f3   :  { %v661_v17 = vsub.f32 %v1403_v42, %v561_v8  ;;  %v574_v18 = vrot.slane %v573_v9, 1  ;;  %v586_v19 = vrot.slane %v585_v10, 2  ;;  %v598_v20 = vrot.slane %v597_v15, 4 }
 0x2f4   :  { %v660_v21 = vsub.f32 %v468_v44, %v554_v12  ;;  %v567_v22 = vrot.slane %v566_v13, 1  ;;  %v579_v23 = vrot.slane %v578_v14, 2  ;;  %v590_v24 = vsel %vm547_vm6, %v1724_v16, -inf }
 0x2f5   :  { %v678_v25 = vmul.f32 1.442695, %v661_v17  ;;  %v575_v26 = vmax.f32 %v573_v9, %v574_v18  ;;  %v587_v27 = vmax.f32 %v585_v10, %v586_v19  ;;  %v599_v28 = vmax.f32 %v597_v15, %v598_v20  ;;  %v1728_v29 = vpop.f32.mrb[8].mxu1 }
 0x2f6   :  { %v676_v30 = vmul.f32 1.442695, %v660_v21  ;;  %v568_v31 = vmax.f32 %v566_v13, %v567_v22  ;;  %v580_v32 = vmax.f32 %v578_v14, %v579_v23  ;;  %v591_v33 = vrot.slane %v590_v24, 4  ;;  %v1730_v34 = vpop.f32.mrb[9].mxu1 }
 0x2f7   :  { %1482 = vpow2.f32 %v678_v25  ;;  %v663_v35 = vsub.f32 %v1406_v49, %v575_v26  ;;  %v588_v36 = vrot.slane %v587_v27, 1  ;;  %v600_v37 = vrot.slane %v599_v28, 2 }
 0x2f8   :  { %1484 = vpow2.f32 %v676_v30  ;;  %v662_v38 = vsub.f32 %v478_v52, %v568_v31  ;;  %v581_v39 = vrot.slane %v580_v32, 1  ;;  %v592_v40 = vmax.f32 %v590_v24, %v591_v33 }
 0x2f9   :  { %v682_v41 = vmul.f32 1.442695, %v663_v35  ;;  %v589_v42 = vmax.f32 %v587_v27, %v588_v36  ;;  %v601_v43 = vmax.f32 %v599_v28, %v600_v37  ;;  %v611_v44 = vsel %vm547_vm6, %v1728_v29, -inf  ;;  %v1734_v45 = vpop.f32.mrb[10].mxu1 }
 0x2fa   :  { %v680_v46 = vmul.f32 1.442695, %v662_v38  ;;  %v582_v47 = vmax.f32 %v580_v32, %v581_v39  ;;  %v593_v48 = vrot.slane %v592_v40, 2  ;;  %v612_v50 = vrot.slane %v611_v44, 4  ;;  %v1736_v51 = vpop.f32.mrb[11].mxu1 }
 0x2fb   :  { %1486 = vpow2.f32 %v682_v41  ;;  %v665_v49 = vsub.f32 %v1712_v60, %v589_v42  ;;  %v602_v52 = vrot.slane %v601_v43, 1  ;;  %v604_v53 = vsel %vm547_vm6, %v1730_v34, -inf }
 0x2fc   :  { %1488 = vpow2.f32 %v680_v46  ;;  %v664_v54 = vsub.f32 %v1716_v0, %v582_v47  ;;  %v594_v55 = vmax.f32 %v592_v40, %v593_v48  ;;  %v613_v56 = vmax.f32 %v611_v44, %v612_v50 }
 0x2fd   :  { %v686_v57 = vmul.f32 1.442695, %v665_v49  ;;  %v603_v58 = vmax.f32 %v601_v43, %v602_v52  ;;  %v605_v59 = vrot.slane %v604_v53, 4  ;;  %v625_v61 = vsel %vm547_vm6, %v1734_v45, -inf  ;;  %v1744_v62 = vpop.f32.mrb[12].mxu1 }
 0x2fe   :  { %v684_v63 = vmul.f32 1.442695, %v664_v54  ;;  %v595_v1 = vrot.slane %v594_v55, 1  ;;  %v614_v60 = vrot.slane %v613_v56, 2  ;;  %v626_v2 = vrot.slane %v625_v61, 4  ;;  %v1746_v3 = vpop.f32.mrb[13].mxu1 }
 0x2ff   :  { %1490 = vpow2.f32 %v686_v57  ;;  %v667_v4 = vsub.f32 %v1720_v11, %v603_v58  ;;  %v606_v0 = vmax.f32 %v604_v53, %v605_v59  ;;  %v618_v12 = vsel %vm547_vm6, %v1736_v51, -inf }
 0x300   :  { %1492 = vpow2.f32 %v684_v63  ;;  %v596_v5 = vmax.f32 %v594_v55, %v595_v1  ;;  %v615_v6 = vmax.f32 %v613_v56, %v614_v60  ;;  %v627_v7 = vmax.f32 %v625_v61, %v626_v2 }
 0x301   :  { %v1749_v8 = vpop.eup %1482  ;;  %v690_v9 = vmul.f32 1.442695, %v667_v4  ;;  %v607_v10 = vrot.slane %v606_v0, 2  ;;  %v1753_v13 = vpop.f32.mrb[14].mxu1  ;;  %v619_v31 = vrot.slane %v618_v12, 4  ;;  %v639_v43 = vsel %vm547_vm6, %v1744_v62, -inf }
 0x302   :  { %v1755_v14 = vpop.eup %1484  ;;  %v715_v15 = vsel %vm547_vm6, %v1749_v8, 0.0  ;;  %v666_v11 = vsub.f32 %v1724_v16, %v596_v5  ;;  %v616_v17 = vrot.slane %v615_v6, 1  ;;  %v628_v18 = vrot.slane %v627_v7, 2  ;;  %v1760_v19 = vpop.f32.mrb[15].mxu1 }
 0x303   :  { %v716_v20 = vrot.slane %v715_v15, 4  ;;  %v708_v21 = vsel %vm547_vm6, %v1755_v14, 0.0  ;;  %1494 = vpow2.f32 %v690_v9  ;;  %v608_v22 = vmax.f32 %v606_v0, %v607_v10 }
 0x304   :  { %v709_v23 = vrot.slane %v708_v21, 4  ;;  %v688_v24 = vmul.f32 1.442695, %v666_v11  ;;  %v617_v25 = vmax.f32 %v615_v6, %v616_v17  ;;  %v629_v30 = vmax.f32 %v627_v7, %v628_v18 }
 0x305   :  { %v1764_v26 = vpop.eup %1486  ;;  %v717_v27 = vadd.f32 %v716_v20, %v715_v15  ;;  %v609_v28 = vrot.slane %v608_v22, 1  ;;  %v620_v53 = vmax.f32 %v618_v12, %v619_v31  ;;  %v640_v2 = vrot.slane %v639_v43, 4 }
 0x306   :  { %v1766_v16 = vpop.eup %1488  ;;  %v710_v32 = vadd.f32 %v709_v23, %v708_v21  ;;  %v729_v33 = vsel %vm547_vm6, %v1764_v26, 0.0  ;;  %1496 = vpow2.f32 %v688_v24  ;;  %v669_v35 = vsub.f32 %v1728_v29, %v617_v25 }
 0x307   :  { %v718_v36 = vrot.slane %v717_v27, 2  ;;  %v730_v37 = vrot.slane %v729_v33, 4  ;;  %v722_v38 = vsel %vm547_vm6, %v1766_v16, 0.0  ;;  %v610_v39 = vmax.f32 %v608_v22, %v609_v28 }
 0x308   :  { %v711_v40 = vrot.slane %v710_v32, 2  ;;  %v723_v41 = vrot.slane %v722_v38, 4  ;;  %v694_v42 = vmul.f32 1.442695, %v669_v35  ;;  %v630_v50 = vrot.slane %v629_v30, 1 }
 0x309   :  { %v1775_v44 = vpop.eup %1490  ;;  %v719_v46 = vadd.f32 %v718_v36, %v717_v27  ;;  %v731_v47 = vadd.f32 %v730_v37, %v729_v33  ;;  %v668_v48 = vsub.f32 %v1730_v34, %v610_v39  ;;  %v621_v6 = vrot.slane %v620_v53, 2 }
 0x30a   :  { %v1778_v29 = vpop.eup %1492  ;;  %v724_v49 = vadd.f32 %v723_v41, %v722_v38  ;;  %v743_v52 = vsel %vm547_vm6, %v1775_v44, 0.0  ;;  %1498 = vpow2.f32 %v694_v42  ;;  %v712_v54 = vadd.f32 %v711_v40, %v710_v32 }
 0x30b   :  { %v732_v55 = vrot.slane %v731_v47, 2  ;;  %v744_v56 = vrot.slane %v743_v52, 4  ;;  %v736_v57 = vsel %vm547_vm6, %v1778_v29, 0.0  ;;  %v692_v61 = vmul.f32 1.442695, %v668_v48 }
 0x30c   :  { %v725_v58 = vrot.slane %v724_v49, 2  ;;  %v737_v59 = vrot.slane %v736_v57, 4  ;;  %v720_v34 = vrot.slane %v719_v46, 1  ;;  %v631_v60 = vmax.f32 %v629_v30, %v630_v50 }
 0x30d   :  { %v1784_v63 = vpop.eup %1494  ;;  %v745_v1 = vadd.f32 %v744_v56, %v743_v52  ;;  %v733_v4 = vadd.f32 %v732_v55, %v731_v47  ;;  %v713_v7 = vrot.slane %v712_v54, 1  ;;  %1500 = vpow2.f32 %v692_v61 }
 0x30e   :  { %v738_v0 = vadd.f32 %v737_v59, %v736_v57  ;;  %v757_v5 = vsel %vm547_vm6, %v1784_v63, 0.0  ;;  %v726_v9 = vadd.f32 %v725_v58, %v724_v49  ;;  %v671_v17 = vsub.f32 %v1734_v45, %v631_v60 }
 0x30f   :  { %v746_v10 = vrot.slane %v745_v1, 2  ;;  %v758_v12 = vrot.slane %v757_v5, 4  ;;  %v721_v18 = vadd.f32 %v720_v34, %v719_v46  ;;  %v734_v22 = vrot.slane %v733_v4, 1 }
 0x310   :  { %v1788_v15 = vpop.eup %1496  ;;  %v739_v11 = vrot.slane %v738_v0, 2  ;;  %v698_v25 = vmul.f32 1.442695, %v671_v17  ;;  %v714_v27 = vadd.f32 %v713_v7, %v712_v54  ;;  %v727_v28 = vrot.slane %v726_v9, 1 }
 0x311   :  { %v747_v20 = vadd.f32 %v746_v10, %v745_v1  ;;  %v750_v21 = vsel %vm547_vm6, %v1788_v15, 0.0  ;;  %v759_v23 = vadd.f32 %v758_v12, %v757_v5  ;;  %v622_v30 = vmax.f32 %v620_v53, %v621_v6 }
 0x312   :  { %v751_v24 = vrot.slane %v750_v21, 4  ;;  %v641_v31 = vmax.f32 %v639_v43, %v640_v2  ;;  %v740_v33 = vadd.f32 %v739_v11, %v738_v0  ;;  %1502 = vpow2.f32 %v698_v25 }
 0x313   :  { %v632_v45 = vsel %vm547_vm6, %v1746_v3, -inf  ;;  %1504 = vrcp.f32 %v721_v18  ;;  %v748_v36 = vrot.slane %v747_v20, 1  ;;  %v623_v38 = vrot.slane %v622_v30, 1 }
 0x314   :  { %v1793_v32 = vpop.eup %1498  ;;  %v752_v35 = vadd.f32 %v751_v24, %v750_v21  ;;  %v735_v39 = vadd.f32 %v734_v22, %v733_v4  ;;  %v760_v40 = vrot.slane %v759_v23, 2  ;;  %v642_v42 = vrot.slane %v641_v31, 2 }
 0x315   :  { %v771_v37 = vsel %vm547_vm6, %v1793_v32, 0.0  ;;  %v728_v46 = vadd.f32 %v727_v28, %v726_v9  ;;  %v624_v43 = vmax.f32 %v622_v30, %v623_v38  ;;  %v633_v47 = vrot.slane %v632_v45, 4 }
 0x316   :  { %v772_v41 = vrot.slane %v771_v37, 4  ;;  %v653_v48 = vsel %vm547_vm6, %v1753_v13, -inf  ;;  %v741_v50 = vrot.slane %v740_v33, 1  ;;  %v753_v49 = vrot.slane %v752_v35, 2 }
 0x317   :  { %v643_v52 = vmax.f32 %v641_v31, %v642_v42  ;;  %v654_v53 = vrot.slane %v653_v48, 4  ;;  %v749_v54 = vadd.f32 %v748_v36, %v747_v20  ;;  %v670_v55 = vsub.f32 %v1736_v51, %v624_v43  ;;  %v1804_v58 = vpop.eup %1500 }
 0x318   :  { %v634_v56 = vmax.f32 %v632_v45, %v633_v47  ;;  %v646_v57 = vsel %vm547_vm6, %v1760_v19, -inf  ;;  %v761_v59 = vadd.f32 %v760_v40, %v759_v23  ;;  %v773_v61 = vadd.f32 %v772_v41, %v771_v37 }
 0x319   :  { %v644_v34 = vrot.slane %v643_v52, 1  ;;  %v655_v1 = vmax.f32 %v653_v48, %v654_v53  ;;  %v764_v60 = vsel %vm547_vm6, %v1804_v58, 0.0  ;;  %v696_v2 = vmul.f32 1.442695, %v670_v55 }
 0x31a   :  { %v635_v4 = vrot.slane %v634_v56, 2  ;;  %v647_v0 = vrot.slane %v646_v57, 4  ;;  %v742_v5 = vadd.f32 %v741_v50, %v740_v33  ;;  %v754_v6 = vadd.f32 %v753_v49, %v752_v35 }
 0x31b   :  { %v765_v7 = vrot.slane %v764_v60, 4  ;;  %v645_v51 = vmax.f32 %v643_v52, %v644_v34  ;;  %1506 = vpow2.f32 %v696_v2  ;;  %v656_v10 = vrot.slane %v655_v1, 2 }
 0x31c   :  { %v636_v9 = vmax.f32 %v634_v56, %v635_v4  ;;  %v648_v12 = vmax.f32 %v646_v57, %v647_v0  ;;  %v1808_v11 = vpop.eup %1502  ;;  %v774_v17 = vrot.slane %v773_v61, 2  ;;  %1508 = vrcp.f32 %v714_v27 }
 0x31d   :  { %v766_v18 = vadd.f32 %v765_v7, %v764_v60  ;;  %v673_v20 = vsub.f32 %v1744_v62, %v645_v51  ;;  %v1505_v21 = vpop.eup %1504  ;;  %v785_v22 = vsel %vm547_vm6, %v1808_v11, 0.0  ;;  %v657_v24 = vmax.f32 %v655_v1, %v656_v10 }
 0x31e   :  { %v637_v23 = vrot.slane %v636_v9, 1  ;;  %v649_v25 = vrot.slane %v648_v12, 2  ;;  %v755_v28 = vrot.slane %v754_v6, 1  ;;  %v786_v31 = vrot.slane %v785_v22, 4 }
 0x31f   :  { %v767_v30 = vrot.slane %v766_v18, 2  ;;  %v702_v33 = vmul.f32 1.442695, %v673_v20  ;;  %v762_v35 = vrot.slane %v761_v59, 1  ;;  %v658_v36 = vrot.slane %v657_v24, 1 }
 0x320   :  { %v638_v45 = vmax.f32 %v636_v9, %v637_v23  ;;  %v650_v37 = vmax.f32 %v648_v12, %v649_v25  ;;  %v775_v38 = vadd.f32 %v774_v17, %v773_v61  ;;  %v787_v41 = vadd.f32 %v786_v31, %v785_v22 }
 0x321   :  { %v768_v40 = vadd.f32 %v767_v30, %v766_v18  ;;  %1510 = vpow2.f32 %v702_v33  ;;  %v659_v27 = vmax.f32 %v657_v24, %v658_v36  ;;  %v756_v43 = vadd.f32 %v755_v28, %v754_v6 }
 0x322   :  { %v672_v62 = vsub.f32 %v1746_v3, %v638_v45  ;;  %v651_v42 = vrot.slane %v650_v37, 1  ;;  %1512 = vrcp.f32 %v728_v46  ;;  %v788_v48 = vrot.slane %v787_v41, 2 }
 0x323   :  { %v769_v47 = vrot.slane %v768_v40, 1  ;;  %1514 = vrcp.f32 %v735_v39  ;;  %v675_v49 = vsub.f32 %v1753_v13, %v659_v27  ;;  %v763_v53 = vadd.f32 %v762_v35, %v761_v59 }
 0x324   :  { %v700_v50 = vmul.f32 1.442695, %v672_v62  ;;  %v652_v52 = vmax.f32 %v650_v37, %v651_v42  ;;  %1516 = vrcp.f32 %v742_v5  ;;  %v776_v55 = vrot.slane %v775_v38, 1 }
 0x325   :  { %1518 = vrcp.f32 %v749_v54  ;;  %v1815_v56 = vpop.eup %1506  ;;  %v706_v57 = vmul.f32 1.442695, %v675_v49  ;;  %v770_v46 = vadd.f32 %v769_v47, %v768_v40  ;;  %v789_v34 = vadd.f32 %v788_v48, %v787_v41 }
 0x326   :  { %1520 = vpow2.f32 %v700_v50  ;;  %v674_v3 = vsub.f32 %v1760_v19, %v652_v52  ;;  %v1509_v61 = vpop.eup %1508  ;;  %v778_v39 = vsel %vm547_vm6, %v1815_v56, 0.0  ;;  %v777_v60 = vadd.f32 %v776_v55, %v775_v38 }
 0x327   :  { %1522 = vrcp.f32 %v756_v43  ;;  %v779_v1 = vrot.slane %v778_v39, 4  ;;  %v836_v59 = vmul.f32 %v1509_v61, %v1755_v14  ;;  %v837_v54 = vmul.f32 %v1505_v21, %v1749_v8 }
 0x328   :  { %1524 = vpow2.f32 %v706_v57  ;;  %v704_v13 = vmul.f32 1.442695, %v674_v3  ;;  %v790_v4 = vrot.slane %v789_v34, 1 }
 0x329   :  { %1526 = vrcp.f32 %v763_v53  ;;  %v780_v2 = vadd.f32 %v779_v1, %v778_v39  ;;  %1427 = vmatprep.mubr.msk.f32.mxu0 %vm547_vm6, %v836_v59 }
 0x32a   :  { %1528 = vpow2.f32 %v704_v13  ;;  %1428 = vmatmul.mubr.msk.f32.vlgmr.msra.gmra.mrb[2].mxu0 %vm547_vm6, %v837_v54  ;;  %v791_v17 = vadd.f32 %v790_v4, %v789_v34 }
 0x32b   :  { %v1823_v19 = vpop.eup %1510  ;;  %1530 = vrcp.f32 %v770_v46  ;;  %v781_v5 = vrot.slane %v780_v2, 2 }
 0x32c   :  { %v1513_v0 = vpop.eup %1512  ;;  %v799_v6 = vsel %vm547_vm6, %v1823_v19, 0.0  ;;  %1532 = vrcp.f32 %v777_v60 }
 0x32d   :  { %v1515_v14 = vpop.eup %1514  ;;  %v800_v7 = vrot.slane %v799_v6, 4  ;;  %v838_v8 = vmul.f32 %v1513_v0, %v1766_v16  ;;  %v782_v9 = vadd.f32 %v781_v5, %v780_v2  ;;  %1534 = vrcp.f32 %v791_v17 }
 0x32e   :  { %v1517_v51 = vpop.eup %1516  ;;  %v839_v10 = vmul.f32 %v1515_v14, %v1764_v26 }
 0x32f   :  { %v1519_v12 = vpop.eup %1518  ;;  %v801_v18 = vadd.f32 %v800_v7, %v799_v6  ;;  %1430 = vmatprep.mubr.msk.f32.mxu0 %vm547_vm6, %v838_v8  ;;  %v840_v20 = vmul.f32 %v1517_v51, %v1778_v29  ;;  %v783_v22 = vrot.slane %v782_v9, 1 }
 0x330   :  { %v1521_v21 = vpop.eup %1520  ;;  %1431 = vmatmul.mubr.msk.f32.gmra.mrb[4].mxu0 %vm547_vm6, %v839_v10  ;;  %v841_v30 = vmul.f32 %v1519_v12, %v1775_v44 }
 0x331   :  { %v1523_v23 = vpop.eup %1522  ;;  %v802_v24 = vrot.slane %v801_v18, 2  ;;  %v792_v16 = vsel %vm547_vm6, %v1521_v21, 0.0  ;;  %1433 = vmatprep.mubr.msk.f32.mxu0 %vm547_vm6, %v840_v20  ;;  %v784_v28 = vadd.f32 %v783_v22, %v782_v9 }
 0x332   :  { %v1525_v25 = vpop.eup %1524  ;;  %v793_v26 = vrot.slane %v792_v16, 4  ;;  %v842_v31 = vmul.f32 %v1523_v23, %v1788_v15 }
 0x333   :  { %v1527_v33 = vpop.eup %1526  ;;  %v803_v35 = vadd.f32 %v802_v24, %v801_v18  ;;  %v813_v29 = vsel %vm547_vm6, %v1525_v25, 0.0  ;;  %1536 = vrcp.f32 %v784_v28 }
 0x334   :  { %v1529_v45 = vpop.eup %1528  ;;  %v794_v36 = vadd.f32 %v793_v26, %v792_v16  ;;  %v814_v37 = vrot.slane %v813_v29, 4  ;;  %1434 = vmatmul.mubr.msk.f32.gmra.mrb[6].mxu0 %vm547_vm6, %v841_v30  ;;  %v843_v44 = vmul.f32 %v1527_v33, %v1784_v63 }
 0x335   :  { %v1531_v38 = vpop.eup %1530  ;;  %v804_v40 = vrot.slane %v803_v35, 1  ;;  %v806_v41 = vsel %vm547_vm6, %v1529_v45, 0.0  ;;  %1436 = vmatprep.mubr.msk.f32.mxu0 %vm547_vm6, %v842_v31 }
 0x336   :  { %v795_v15 = vrot.slane %v794_v36, 2  ;;  %v815_v62 = vadd.f32 %v814_v37, %v813_v29  ;;  %v807_v27 = vrot.slane %v806_v41, 4  ;;  %v844_v42 = vmul.f32 %v1531_v38, %v1804_v58  ;;  %v1533_v43 = vpop.eup %1532 }
 0x337   :  { %v805_v49 = vadd.f32 %v804_v40, %v803_v35  ;;  %v845_v57 = vmul.f32 %v1533_v43, %v1793_v32  ;;  %v1535_v58 = vpop.eup %1534 }
 0x338   :  { %v796_v47 = vadd.f32 %v795_v15, %v794_v36  ;;  %v816_v48 = vrot.slane %v815_v62, 2  ;;  %v808_v50 = vadd.f32 %v807_v27, %v806_v41  ;;  %1437 = vmatmul.mubr.msk.f32.gmra.mrb[8].mxu0 %vm547_vm6, %v843_v44  ;;  %v847_v59 = vmul.f32 %v1535_v58, %v1808_v11  ;;  %v1051_v11 = vpop.permute.xlu0 %1050 }
 0x339   :  { %1439 = vmatprep.mubr.msk.f32.mxu0 %vm547_vm6, %v844_v42  ;;  %1538 = vrcp.f32 %v805_v49 }
 0x33a   :  { %v797_v52 = vrot.slane %v796_v47, 1  ;;  %v817_v53 = vadd.f32 %v816_v48, %v815_v62  ;;  %v809_v55 = vrot.slane %v808_v50, 2  ;;  %v1870_v48 = vld [vmem:[#allocation2 + $0x8] sm:$0xff] }
 0x33c   :  { %v798_v63 = vadd.f32 %v797_v52, %v796_v47  ;;  %v818_v3 = vrot.slane %v817_v53, 1  ;;  %v810_v61 = vadd.f32 %v809_v55, %v808_v50  ;;  %1440 = vmatmul.mubr.msk.f32.gmra.mrb[10].mxu0 %vm547_vm6, %v845_v57  ;;  %v1193_v50 = vrot.slane %v1870_v48, 1 }
 0x33d   :  { %v1537_v46 = vpop.eup %1536 }
 0x33e   :  { %v819_v34 = vadd.f32 %v818_v3, %v817_v53  ;;  %v811_v39 = vrot.slane %v810_v61, 1  ;;  %1540 = vrcp.f32 %v798_v63  ;;  %v846_v1 = vmul.f32 %v1537_v46, %v1815_v56 }
 0x340   :  { %v812_v13 = vadd.f32 %v811_v39, %v810_v61  ;;  %1442 = vmatprep.mubr.msk.f32.mxu0 %vm547_vm6, %v846_v1  ;;  %1542 = vrcp.f32 %v819_v34 }
 0x341   :  { %1443 = vmatmul.mubr.msk.f32.gmra.mrb[12].mxu0 %vm547_vm6, %v847_v59 }
 0x342   :  { %1544 = vrcp.f32 %v812_v13 }
 0x343   :  { %v1539_v32 = vpop.eup %1538 }
 0x344   :  { %v849_v2 = vmul.f32 %v1539_v32, %v1823_v19 }
 0x348   :  { %v1541_v60 = vpop.eup %1540 }
 0x349   :  { %v848_v54 = vmul.f32 %v1541_v60, %v1521_v21  ;;  %v1858_v21 = vld [vmem:[#allocation2] sm:$0xff] }
 0x34a   :  { %v1543_v4 = vpop.eup %1542  ;;  %v1186_v22 = vrot.slane %v1858_v21, 1  ;;  %v1188_v24 = vrot.slane %v1858_v21, 3  ;;  %v1187_v26 = vrot.slane %v1858_v21, 2  ;;  %v1190_v30 = vrot.slane %v1858_v21, 5 }
 0x34b   :  { %1445 = vmatprep.mubr.msk.f32.mxu0 %vm547_vm6, %v848_v54  ;;  %v851_v5 = vmul.f32 %v1543_v4, %v1525_v25  ;;  %v1192_v41 = vrot.slane %v1858_v21, 7  ;;  %v1191_v27 = vrot.slane %v1858_v21, 6 }
 0x34c   :  { %v1545_v0 = vpop.eup %1544  ;;  %1446 = vmatmul.mubr.msk.f32.gmra.mrb[14].mxu0 %vm547_vm6, %v849_v2 }
 0x34d   :  { %v850_v56 = vmul.f32 %v1545_v0, %v1529_v45  ;;  %v1189_v45 = vrot.slane %v1858_v21, 4 }
 0x34f   :  { %1448 = vmatprep.mubr.msk.f32.mxu0 %vm547_vm6, %v850_v56 }
 0x350   :  { %1449 = vmatmul.mubr.msk.f32.gmra.mrb[16].mxu0 %vm547_vm6, %v851_v5 }
 0x3fd   :  { %v1429_v6 = vpop.f32.mrb[2].mxu0 }
 0x3fe   :  { %v1057_v14 = vmul.f32 %v1429_v6, %v1051_v11  ;;  %v971_v7 = vpop.f32.mrb[3].mxu0 }
 0x3ff   :  { %v1056_v8 = vmul.f32 %v1051_v11, %v971_v7 }
 0x400   :  { %v1079_v51 = vsel %vm36_vm0, %v1057_v14, 0.0 }
 0x401   :  { %v1080_v19 = vrot.slane %v1079_v51, 4  ;;  %v1072_v9 = vsel %vm36_vm0, %v1056_v8, 0.0 }
 0x402   :  { %v1073_v10 = vrot.slane %v1072_v9, 4 }
 0x403   :  { %v1432_v12 = vpop.f32.mrb[4].mxu0  ;;  %v1081_v17 = vadd.f32 %v1080_v19, %v1079_v51  ;;  %v1877_v19 = vpop.permute.xlu1 %1052 }
 0x404   :  { %v1059_v18 = vmul.f32 %v1432_v12, %v1051_v11  ;;  %v981_v20 = vpop.f32.mrb[5].mxu0  ;;  %v1074_v23 = vadd.f32 %v1073_v10, %v1072_v9 }
 0x405   :  { %v1058_v16 = vmul.f32 %v1051_v11, %v981_v20  ;;  %v1082_v25 = vrot.slane %v1081_v17, 2 }
 0x406   :  { %v1093_v28 = vsel %vm36_vm0, %v1059_v18, 0.0  ;;  %v1075_v31 = vrot.slane %v1074_v23, 2 }
 0x407   :  { %v1094_v33 = vrot.slane %v1093_v28, 4  ;;  %v1086_v35 = vsel %vm36_vm0, %v1058_v16, 0.0  ;;  %v1435_v29 = vpop.f32.mrb[6].mxu0  ;;  %v1083_v36 = vadd.f32 %v1082_v25, %v1081_v17 }
 0x408   :  { %v1087_v37 = vrot.slane %v1086_v35, 4  ;;  %v1061_v38 = vmul.f32 %v1435_v29, %v1051_v11  ;;  %v991_v40 = vpop.f32.mrb[7].mxu0  ;;  %v1076_v44 = vadd.f32 %v1075_v31, %v1074_v23 }
 0x409   :  { %v1095_v15 = vadd.f32 %v1094_v33, %v1093_v28  ;;  %v1060_v62 = vmul.f32 %v1051_v11, %v991_v40  ;;  %v1084_v42 = vrot.slane %v1083_v36, 1 }
 0x40a   :  { %v1088_v43 = vadd.f32 %v1087_v37, %v1086_v35  ;;  %v1107_v47 = vsel %vm36_vm0, %v1061_v38, 0.0  ;;  %v1077_v49 = vrot.slane %v1076_v44, 1 }
 0x40b   :  { %v1096_v52 = vrot.slane %v1095_v15, 2  ;;  %v1108_v53 = vrot.slane %v1107_v47, 4  ;;  %v1100_v55 = vsel %vm36_vm0, %v1060_v62, 0.0  ;;  %v1438_v57 = vpop.f32.mrb[8].mxu0  ;;  %v1085_v63 = vadd.f32 %v1084_v42, %v1083_v36 }
 0x40c   :  { %v1089_v3 = vrot.slane %v1088_v43, 2  ;;  %v1101_v61 = vrot.slane %v1100_v55, 4  ;;  %v1063_v58 = vmul.f32 %v1438_v57, %v1051_v11  ;;  %v1001_v46 = vpop.f32.mrb[9].mxu0  ;;  %v1078_v34 = vadd.f32 %v1077_v49, %v1076_v44 }
 0x40d   :  { %v1097_v39 = vadd.f32 %v1096_v52, %v1095_v15  ;;  %v1109_v1 = vadd.f32 %v1108_v53, %v1107_v47  ;;  %v1062_v13 = vmul.f32 %v1051_v11, %v1001_v46  ;;  %v1217_v59 = vadd.f32 %v1186_v22, %v1085_v63 }
 0x40e   :  { %v1090_v32 = vadd.f32 %v1089_v3, %v1088_v43  ;;  %v1102_v60 = vadd.f32 %v1101_v61, %v1100_v55  ;;  %v1121_v54 = vsel %vm36_vm0, %v1063_v58, 0.0  ;;  %v1216_v2 = vadd.f32 %v1858_v21, %v1078_v34 }
 0x40f   :  { %v1098_v4 = vrot.slane %v1097_v39, 1  ;;  %v1110_v0 = vrot.slane %v1109_v1, 2  ;;  %v1122_v56 = vrot.slane %v1121_v54, 4  ;;  %v1441_v5 = vpop.f32.mrb[10].mxu0  ;;  %v1248_v6 = vrot.slane %v1217_v59, 7 }
 0x410   :  { %v1091_v14 = vrot.slane %v1090_v32, 1  ;;  %v1103_v7 = vrot.slane %v1102_v60, 2  ;;  %v1114_v8 = vsel %vm36_vm0, %v1062_v13, 0.0  ;;  %v1011_v51 = vpop.f32.mrb[11].mxu0  ;;  %v1065_v22 = vmul.f32 %v1441_v5, %v1877_v19 }
 0x411   :  { %v1099_v11 = vadd.f32 %v1098_v4, %v1097_v39  ;;  %v1111_v9 = vadd.f32 %v1110_v0, %v1109_v1  ;;  %v1123_v10 = vadd.f32 %v1122_v56, %v1121_v54  ;;  %v1115_v12 = vrot.slane %v1114_v8, 4 }
 0x412   :  { %v1250_v17 = vsel %vm1249_vm7, %v1248_v6, %v1216_v2  ;;  %v1092_v18 = vadd.f32 %v1091_v14, %v1090_v32  ;;  %v1104_v20 = vadd.f32 %v1103_v7, %v1102_v60  ;;  %v1135_v35 = vsel %vm36_vm0, %v1065_v22, 0.0 }
 0x413   :  { %v1219_v23 = vadd.f32 %v1188_v24, %v1099_v11  ;;  %v1112_v16 = vrot.slane %v1111_v9, 1  ;;  %v1124_v25 = vrot.slane %v1123_v10, 2  ;;  %v1116_v28 = vadd.f32 %v1115_v12, %v1114_v8 }
 0x414   :  { %v1218_v31 = vadd.f32 %v1187_v26, %v1092_v18  ;;  %v1105_v33 = vrot.slane %v1104_v20, 1  ;;  %v1064_v29 = vmul.f32 %v1877_v19, %v1011_v51  ;;  %v1444_v40 = vpop.f32.mrb[12].mxu0  ;;  %v1195_v44 = vrot.slane %v1870_v48, 3 }
 0x415   :  { %v1113_v36 = vadd.f32 %v1112_v16, %v1111_v9  ;;  %v1125_v37 = vadd.f32 %v1124_v25, %v1123_v10  ;;  %v1117_v38 = vrot.slane %v1116_v28, 2  ;;  %v1136_v62 = vrot.slane %v1135_v35, 4  ;;  %v1021_v43 = vpop.f32.mrb[13].mxu0 }
 0x416   :  { %v1251_v24 = vrot.slane %v1218_v31, 6  ;;  %v1106_v15 = vadd.f32 %v1105_v33, %v1104_v20  ;;  %v1128_v42 = vsel %vm36_vm0, %v1064_v29, 0.0  ;;  %v1254_v47 = vrot.slane %v1219_v23, 5 }
 0x417   :  { %v1126_v26 = vrot.slane %v1125_v37, 1  ;;  %v1118_v49 = vadd.f32 %v1117_v38, %v1116_v28  ;;  %v1129_v52 = vrot.slane %v1128_v42, 4  ;;  %v1137_v57 = vadd.f32 %v1136_v62, %v1135_v35 }
 0x418   :  { %v1253_v53 = vsel %vm1252_vm8, %v1251_v24, %v1250_v17  ;;  %v1220_v55 = vadd.f32 %v1189_v45, %v1106_v15  ;;  %v1067_v63 = vmul.f32 %v1444_v40, %v1877_v19  ;;  %v1221_v3 = vadd.f32 %v1190_v30, %v1113_v36 }
 0x419   :  { %v1127_v61 = vadd.f32 %v1126_v26, %v1125_v37  ;;  %v1119_v58 = vrot.slane %v1118_v49, 1  ;;  %v1130_v46 = vadd.f32 %v1129_v52, %v1128_v42  ;;  %v1138_v39 = vrot.slane %v1137_v57, 2 }
 0x41a   :  { %v1257_v34 = vrot.slane %v1220_v55, 4  ;;  %v1149_v1 = vsel %vm36_vm0, %v1067_v63, 0.0  ;;  %v1066_v13 = vmul.f32 %v1877_v19, %v1021_v43  ;;  %v1256_v30 = vsel %vm1255_vm9, %v1254_v47, %v1253_v53 }
 0x41b   :  { %v1120_v59 = vadd.f32 %v1119_v58, %v1118_v49  ;;  %v1131_v32 = vrot.slane %v1130_v46, 2  ;;  %v1150_v60 = vrot.slane %v1149_v1, 4  ;;  %v1223_v45 = vadd.f32 %v1192_v41, %v1127_v61 }
 0x41c   :  { %v1139_v54 = vadd.f32 %v1138_v39, %v1137_v57  ;;  %v1142_v2 = vsel %vm36_vm0, %v1066_v13, 0.0  ;;  %v1260_v4 = vrot.slane %v1221_v3, 3  ;;  %v1259_v7 = vsel %vm1258_vm10, %v1257_v34, %v1256_v30 }
 0x41d   :  { %v1222_v0 = vadd.f32 %v1191_v27, %v1120_v59  ;;  %v1132_v56 = vadd.f32 %v1131_v32, %v1130_v46  ;;  %v1151_v5 = vadd.f32 %v1150_v60, %v1149_v1  ;;  %v1143_v14 = vrot.slane %v1142_v2, 4 }
 0x41e   :  { %v1140_v6 = vrot.slane %v1139_v54, 1  ;;  %v1262_v9 = vsel %vm1261_vm11, %v1260_v4, %v1259_v7  ;;  %v1266_v10 = vrot.slane %v1223_v45, 1  ;;  %v1194_v42 = vrot.slane %v1870_v48, 2 }
 0x41f   :  { %v1263_v8 = vrot.slane %v1222_v0, 2  ;;  %v1133_v51 = vrot.slane %v1132_v56, 1  ;;  %v1152_v11 = vrot.slane %v1151_v5, 2  ;;  %v1447_v41 = vpop.f32.mrb[14].mxu0  ;;  %v1144_v17 = vadd.f32 %v1143_v14, %v1142_v2 }
 0x420   :  { %v1141_v12 = vadd.f32 %v1140_v6, %v1139_v54  ;;  %v1069_v18 = vmul.f32 %v1447_v41, %v1877_v19  ;;  %v1031_v21 = vpop.f32.mrb[15].mxu0  ;;  %v1197_v32 = vrot.slane %v1870_v48, 5  ;;  %v1196_v2 = vrot.slane %v1870_v48, 4 }
 0x421   :  { %v1134_v27 = vadd.f32 %v1133_v51, %v1132_v56  ;;  %v1153_v20 = vadd.f32 %v1152_v11, %v1151_v5  ;;  %v1068_v22 = vmul.f32 %v1877_v19, %v1031_v21  ;;  %v1265_v23 = vsel %vm1264_vm12, %v1263_v8, %v1262_v9 }
 0x422   :  { %v1225_v16 = vadd.f32 %v1193_v50, %v1141_v12  ;;  %v1145_v25 = vrot.slane %v1144_v17, 2  ;;  %v1163_v28 = vsel %vm36_vm0, %v1069_v18, 0.0  ;;  %v1268_v31 = vsel %vm1267_vm13, %v1266_v10, %v1265_v23 }
 0x423   :  { %v1224_v33 = vadd.f32 %v1870_v48, %v1134_v27  ;;  %v1154_v35 = vrot.slane %v1153_v20, 1  ;;  %v1164_v29 = vrot.slane %v1163_v28, 4  ;;  %v1156_v36 = vsel %vm36_vm0, %v1068_v22, 0.0  ;;  %v1450_v37 = vpop.f32.mrb[16].mxu0  ;;  %1285 = vst.msk [vmem:[#allocation5] sm:$0xff] %vm36_vm0, %v1268_v31 }
 0x424   :  { %v1269_v38 = vrot.slane %v1225_v16, 7  ;;  %v1146_v40 = vadd.f32 %v1145_v25, %v1144_v17  ;;  %v1157_v24 = vrot.slane %v1156_v36, 4  ;;  %v1071_v15 = vmul.f32 %v1450_v37, %v1877_v19  ;;  %v1041_v50 = vpop.f32.mrb[17].mxu0 }
 0x425   :  { %v1155_v62 = vadd.f32 %v1154_v35, %v1153_v20  ;;  %v1165_v43 = vadd.f32 %v1164_v29, %v1163_v28  ;;  %v1070_v47 = vmul.f32 %v1877_v19, %v1041_v50  ;;  %v1199_v8 = vrot.slane %v1870_v48, 7 }
 0x426   :  { %v1270_v26 = vsel %vm1249_vm7, %v1269_v38, %v1224_v33  ;;  %v1147_v49 = vrot.slane %v1146_v40, 1  ;;  %v1158_v52 = vadd.f32 %v1157_v24, %v1156_v36  ;;  %v1177_v53 = vsel %vm36_vm0, %v1071_v15, 0.0 }
 0x427   :  { %v1166_v55 = vrot.slane %v1165_v43, 2  ;;  %v1178_v57 = vrot.slane %v1177_v53, 4  ;;  %v1170_v63 = vsel %vm36_vm0, %v1070_v47, 0.0  ;;  %v1227_v46 = vadd.f32 %v1195_v44, %v1155_v62 }
 0x428   :  { %v1148_v3 = vadd.f32 %v1147_v49, %v1146_v40  ;;  %v1159_v61 = vrot.slane %v1158_v52, 2  ;;  %v1171_v58 = vrot.slane %v1170_v63, 4  ;;  %v1198_v9 = vrot.slane %v1870_v48, 6 }
 0x429   :  { %v1167_v34 = vadd.f32 %v1166_v55, %v1165_v43  ;;  %v1179_v39 = vadd.f32 %v1178_v57, %v1177_v53  ;;  %v1273_v4 = vrot.slane %v1227_v46, 5 }
 0x42a   :  { %v1226_v1 = vadd.f32 %v1194_v42, %v1148_v3  ;;  %v1160_v19 = vadd.f32 %v1159_v61, %v1158_v52  ;;  %v1172_v13 = vadd.f32 %v1171_v58, %v1170_v63 }
 0x42b   :  { %v1168_v59 = vrot.slane %v1167_v34, 1  ;;  %v1180_v60 = vrot.slane %v1179_v39, 2 }
 0x42c   :  { %v1271_v45 = vrot.slane %v1226_v1, 6  ;;  %v1161_v54 = vrot.slane %v1160_v19, 1  ;;  %v1173_v30 = vrot.slane %v1172_v13, 2 }
 0x42d   :  { %v1169_v0 = vadd.f32 %v1168_v59, %v1167_v34  ;;  %v1181_v56 = vadd.f32 %v1180_v60, %v1179_v39 }
 0x42e   :  { %v1272_v5 = vsel %vm1252_vm8, %v1271_v45, %v1270_v26  ;;  %v1162_v44 = vadd.f32 %v1161_v54, %v1160_v19  ;;  %v1174_v6 = vadd.f32 %v1173_v30, %v1172_v13 }
 0x42f   :  { %v1229_v14 = vadd.f32 %v1197_v32, %v1169_v0  ;;  %v1182_v7 = vrot.slane %v1181_v56, 1  ;;  %v1274_v51 = vsel %vm1255_vm9, %v1273_v4, %v1272_v5 }
 0x430   :  { %v1228_v11 = vadd.f32 %v1196_v2, %v1162_v44  ;;  %v1175_v41 = vrot.slane %v1174_v6, 1 }
 0x431   :  { %v1183_v10 = vadd.f32 %v1182_v7, %v1181_v56  ;;  %v1277_v18 = vrot.slane %v1229_v14, 3 }
 0x432   :  { %v1275_v12 = vrot.slane %v1228_v11, 4  ;;  %v1176_v17 = vadd.f32 %v1175_v41, %v1174_v6 }
 0x433   :  { %v1231_v21 = vadd.f32 %v1199_v8, %v1183_v10 }
 0x434   :  { %v1230_v27 = vadd.f32 %v1198_v9, %v1176_v17  ;;  %v1276_v20 = vsel %vm1258_vm10, %v1275_v12, %v1274_v51 }
 0x435   :  { %v1278_v22 = vsel %vm1261_vm11, %v1277_v18, %v1276_v20  ;;  %v1281_v16 = vrot.slane %v1231_v21, 1 }
 0x436   :  { %v1279_v23 = vrot.slane %v1230_v27, 2 }
 0x438   :  { %v1280_v25 = vsel %vm1264_vm12, %v1279_v23, %v1278_v22 }
 0x439   :  { %v1282_v28 = vsel %vm1267_vm13, %v1281_v16, %v1280_v25 }
 0x43a   :  { %1286 = vst.msk [vmem:[#allocation5 + $0x8] sm:$0xff] %vm36_vm0, %v1282_v28 }
 0x43b   :  { %1581 = shalt.err (!%p1578_p12)
}
 0x43c   :  { %s1582_s24 = scalar_lea.hbm %s1953_s4, 256 }
 0x43d   :  { %p1583_p13 = scmp.ne.s32.totalorder %s1953_s4, %s1582_s24  ;;  %p1586_p0 = scmp.lt.u32.totalorder %s1582_s24, %s1953_s4 }
 0x43f   :  { %p1588_p1 = pnand %p1586_p0, %p1583_p13 }
 0x441   :  { %1591 = shalt.err (!%p1588_p1)
}
 0x442   :  { %1298 = dma.vmem_to_hbm [thread:$0]  %s1293_s20, 256, %s1953_s4, [#allocation4], %s1597_s25, %s1597_s25, %s1598_s26  }
 0x443   :  { %1594 = dma.done.wait [#allocation4], 256  }
 0x444   :  { %1595 = vsyncadd [#allocation4], 4294967040 }
 0x445   :  { %1302 = vsyncpa [#allocation3], 1 }
 0x446   :  { %1303 = vsyncpa [#allocation4], 1 }

</bundles_post_ra>
